<compile_context>
chip_gen: v7x
topology: tpu7x:2x2x1
jax: 0.10.0
libtpu: 0.0.40
codegen_flags: <defaults>
</compile_context>

<pallas_src>
import jax
import jax.numpy as jnp
from jax.experimental import pallas as pl
from jax.experimental.pallas import tpu as pltpu


def _round_up(x: int, m: int) -> int:
    return ((x + m - 1) // m) * m


def _pick_batch_tile(B: int, F: int, itemsize: int = 4) -> int:
    """Rows per batch tile: big enough to amortize per-grid-step overhead (~0.35us),
    small enough that 2x double-buffered (TB, F) f32 tiles stay well inside scoped VMEM."""
    target_bytes = 2 * 1024 * 1024                      # per pipeline buffer (x2 for dbl-buffer)
    rows = max(8, target_bytes // max(1, F * itemsize))
    if rows >= B:
        return _round_up(B, 8)                          # one block covers the whole (padded) batch
    rows = min(rows, 8192)
    # Multiple of 128 keeps the lane-dense (1, TB) out-block legal when tiling.
    return max(128, (rows // 128) * 128)
    # TODO(synk): for very large in_features (128*F*8B > scoped VMEM) add a K-tiled accumulator
    # variant; DeepFM over-arch feature dims don't need it.


def _overarch_kernel(x_ref, w_ref, b_ref, o_ref):
    # x_ref: [TB, F] (VMEM)   w_ref: [1, F] (VMEM, resident)
    # b_ref: [1, 1]  (SMEM)   o_ref: [1, TB] (VMEM, lane-dense)
    # (1,F) x (TB,F)^T -> (1,TB): logits land lane-dense, no relayout needed.
    z = jax.lax.dot_general(
        w_ref[...], x_ref[...],
        dimension_numbers=(((1,), (1,)), ((), ())),
        preferred_element_type=jnp.float32,
    )
    z = z + b_ref[0, 0]
    # Numerically-stable sigmoid: exp of a non-positive argument only (exp runs on the EUP slot).
    e = jnp.exp(-jnp.abs(z))
    sig = jnp.where(z >= 0, 1.0, e) / (1.0 + e)
    o_ref[...] = sig.astype(o_ref.dtype)


def over_arch(features, weight, bias, *, tile_rows=None):
    """features: [B, F]; weight: [1, F] (PyTorch nn.Linear layout); bias: [1]  ->  [B, 1]."""
    B, F = features.shape
    assert weight.shape == (1, F), weight.shape
    out_dtype = features.dtype

    TB = int(tile_rows) if tile_rows is not None else _pick_batch_tile(B, F)
    B_pad = _round_up(B, TB)
    if B_pad != B:
        features = jnp.pad(features, ((0, B_pad - B), (0, 0)))
    n_tiles = B_pad // TB

    weight_f32 = weight.astype(jnp.float32)
    bias_smem = jnp.asarray(bias, jnp.float32).reshape(1, 1)

    out_row = pl.pallas_call(
        _overarch_kernel,
        out_shape=jax.ShapeDtypeStruct((1, B_pad), out_dtype),
        grid_spec=pltpu.PrefetchScalarGridSpec(
            num_scalar_prefetch=0,
            grid=(n_tiles,),
            in_specs=[
                pl.BlockSpec((TB, F), lambda i: (i, 0)),              # batch-tiled, pipelined
                pl.BlockSpec((1, F), lambda i: (0, 0)),               # weight row, stays resident
                pl.BlockSpec(memory_space=pltpu.MemorySpace.SMEM),    # scalar bias in SMEM
            ],
            out_specs=pl.BlockSpec((1, TB), lambda i: (0, i)),        # lane-dense stores
        ),
        compiler_params=pltpu.CompilerParams(
            dimension_semantics=("parallel",),                        # independent tiles; megacore on v7x
        ),
        cost_estimate=pl.CostEstimate(
            flops=2 * B_pad * F,
            transcendentals=B_pad,
            bytes_accessed=4 * (B_pad * F + F + B_pad),
        ),
    )(features, weight_f32, bias_smem)

    return out_row[0, :B].reshape(B, 1)


if __name__ == "__main__":
    key = jax.random.PRNGKey(0)
    k_x, k_w, k_b, k_x2 = jax.random.split(key, 4)

    # Small shapes consistent with the module: Linear(in_features, 1) + Sigmoid.
    B, in_features = 8, 32
    bound = 1.0 / (in_features ** 0.5)  # nn.Linear default init range
    weight = jax.random.uniform(k_w, (1, in_features), jnp.float32, -bound, bound)
    bias = jax.random.uniform(k_b, (1,), jnp.float32, -bound, bound)
    features = jax.random.uniform(k_x, (B, in_features), jnp.float32)

    out = jax.block_until_ready(over_arch(features, weight, bias))
    ref = jax.nn.sigmoid(features @ weight.T + bias)
    assert out.shape == (B, 1)
    assert jnp.allclose(out, ref, atol=1e-5), (out, ref)

    # Also exercise the tiled / padded / multi-step-grid path.
    B2 = 300
    features2 = jax.random.uniform(k_x2, (B2, in_features), jnp.float32)
    out2 = jax.block_until_ready(over_arch(features2, weight, bias, tile_rows=128))
    ref2 = jax.nn.sigmoid(features2 @ weight.T + bias)
    assert out2.shape == (B2, 1)
    assert jnp.allclose(out2, ref2, atol=1e-5), (out2, ref2)

    print("KERNEL_OK")
</pallas_src>

<mosaic_0001>
module attributes {stable_mosaic.version = 11 : i64} {
  func.func @_overarch_kernel(%arg0: i32, %arg1: memref<8x32xf32, #tpu.memory_space<vmem>>, %arg2: memref<1x32xf32, #tpu.memory_space<vmem>>, %arg3: memref<1x1xf32, #tpu.memory_space<smem>>, %arg4: memref<1x8xf32, #tpu.memory_space<vmem>>) attributes {dimension_semantics = [#tpu.dimension_semantics<parallel>], iteration_bounds = array<i64: 1>, scalar_prefetch = 0 : i64, scratch_operands = 0 : i64, tpu.core_type = #tpu.core_type<tc>, window_params = [{transform_indices = @transform_0, window_bounds = array<i64: 8, 32>}, {pipeline_mode = #tpu.pipeline_mode<synchronous>, transform_indices = @transform_1, window_bounds = array<i64: 1, 32>}, {transform_indices = @transform_2, window_bounds = array<i64: 1, 1>}, {transform_indices = @transform_3, window_bounds = array<i64: 1, 8>}]} {
    %c0 = arith.constant 0 : index
    %c0_0 = arith.constant 0 : index
    %0 = vector.load %arg2[%c0, %c0_0] : memref<1x32xf32, #tpu.memory_space<vmem>>, vector<1x32xf32>
    %c0_1 = arith.constant 0 : index
    %c0_2 = arith.constant 0 : index
    %1 = vector.load %arg1[%c0_1, %c0_2] : memref<8x32xf32, #tpu.memory_space<vmem>>, vector<8x32xf32>
    %cst = arith.constant dense<0.000000e+00> : vector<1x8xf32>
    %2 = tpu.matmul %0, %1, %cst {dimension_numbers = #tpu.dot_dimension_numbers<[1], [1], [0], [0], [0, 0, 1, 0], [], []>} : vector<1x32xf32>, vector<8x32xf32>, vector<1x8xf32> -> vector<1x8xf32>
    %c0_3 = arith.constant 0 : index
    %c0_4 = arith.constant 0 : index
    %3 = memref.load %arg3[%c0_3, %c0_4] : memref<1x1xf32, #tpu.memory_space<smem>>
    %4 = vector.broadcast %3 : f32 to vector<1x8xf32>
    %5 = arith.addf %2, %4 : vector<1x8xf32>
    %6 = math.absf %5 : vector<1x8xf32>
    %cst_5 = arith.constant 0.000000e+00 : f32
    %7 = vector.broadcast %cst_5 : f32 to vector<1x8xf32>
    %8 = arith.subf %7, %6 : vector<1x8xf32>
    %9 = math.exp %8 : vector<1x8xf32>
    %cst_6 = arith.constant 0.000000e+00 : f32
    %10 = vector.broadcast %cst_6 : f32 to vector<1x8xf32>
    %11 = arith.cmpf oge, %5, %10 : vector<1x8xf32>
    %cst_7 = arith.constant 1.000000e+00 : f32
    %12 = vector.broadcast %cst_7 : f32 to vector<1x8xf32>
    %13 = arith.select %11, %12, %9 : vector<1x8xi1>, vector<1x8xf32>
    %cst_8 = arith.constant 1.000000e+00 : f32
    %14 = vector.broadcast %cst_8 : f32 to vector<1x8xf32>
    %15 = arith.addf %14, %9 : vector<1x8xf32>
    %16 = arith.divf %13, %15 : vector<1x8xf32>
    %c0_9 = arith.constant 0 : index
    %c0_10 = arith.constant 0 : index
    %17 = vector.load %arg4[%c0_9, %c0_10] : memref<1x8xf32, #tpu.memory_space<vmem>>, vector<1x8xf32>
    tpu.vector_store %arg4[%c0_9, %c0_10], %16 {strides = array<i32>} : memref<1x8xf32, #tpu.memory_space<vmem>>, vector<1x8xf32>,
    return
  }
  func.func @transform_0(%arg0: i32) -> (i32, i32) {
    %c0_i32 = arith.constant 0 : i32
    %c0_i32_0 = arith.constant 0 : i32
    return %arg0, %c0_i32 : i32, i32
  }
  func.func @transform_1(%arg0: i32) -> (i32, i32) {
    %c0_i32 = arith.constant 0 : i32
    %c0_i32_0 = arith.constant 0 : i32
    %c0_i32_1 = arith.constant 0 : i32
    return %c0_i32, %c0_i32_0 : i32, i32
  }
  func.func @transform_2(%arg0: i32) -> (i32, i32) {
    %c0_i32 = arith.constant 0 : i32
    %c0_i32_0 = arith.constant 0 : i32
    %c0_i32_1 = arith.constant 0 : i32
    return %c0_i32, %c0_i32_0 : i32, i32
  }
  func.func @transform_3(%arg0: i32) -> (i32, i32) {
    %c0_i32 = arith.constant 0 : i32
    %c0_i32_0 = arith.constant 0 : i32
    return %c0_i32, %arg0 : i32, i32
  }
}

</mosaic_0001>

<bundles_post_ra>
// kernel: tpu_custom_call.1
= control target key start
LH: loop header
LB: loop body
LE: loop exit
PB: predicated region body
PF: predicated region fallthrough
CT: control target
= control target key end

     0   :  { %9 = vsyncpa [#allocation4], 0  ;;  %s254_s0 = inlined_call_operand.hbm [shape: f32[8,32], index: 0, kind: input, shape index: {}]   ;;  %s255_s1 = inlined_call_operand.vmem [shape: f32[1,32], index: 1, kind: input, shape index: {}]   ;;  %s256_s2 = inlined_call_operand.<no memory space> [shape: f32[1,1], index: 2, kind: input, shape index: {}]   ;;  %s257_s3 = inlined_call_operand.hbm [shape: f32[1,8], index: 3, kind: output, shape index: {}]  }
   0x1   :  { %10 = vsyncpa [#allocation5], 0  ;;  %s200_s12 = smov [#allocation3]   ;;  %s152_s16 = scalar_lea.hbm %s254_s0, 128 }
   0x2   :  { %s17_s13 = sshll.u32 %s200_s12, 4  ;;  %p153_p0 = scmp.ne.s32.totalorder %s254_s0, %s152_s16  ;;  %s18_s13 = int_to_ptr.vmem [resolvable:$true] %s17_s13 }
   0x3   :  { %p156_p1 = scmp.lt.u32.totalorder %s152_s16, %s254_s0 }
   0x5   :  { %p158_p2 = pnand %p156_p1, %p153_p0 }
   0x7   :  { %161 = shalt.err (!%p158_p2)
}
   0x8   :  { %s162_s21 = scalar_lea.vmem %s18_s13, 128  ;;  %p167_p4 = scmp.lt.s32.totalorder %s18_s13, %s18_s13 }
   0x9   :  { %p163_p3 = scmp.ne.s32.totalorder %s18_s13, %s162_s21  ;;  %p168_p5 = scmp.lt.s32.totalorder %s162_s21, %s162_s21 }
   0xb   :  { %p169_p6 = por %p168_p5, %p167_p4 }
   0xd   :  { %p170_p7 = pnand %p169_p6, %p163_p3 }
   0xf   :  { %173 = shalt.err (!%p170_p7)
}
  0x10   :  { %20 = dma.hbm_to_vmem [thread:$0]  %s254_s0, 128, %s18_s13, [#allocation4]  }
  0x11   :  { %196 = dma.done.wait [#allocation4], 128  }
  0x12   :  { %197 = vsyncadd [#allocation4], 4294967168  ;;  %v201_v0 = vmov 0.0   ;;  %vm202_vm0 = vmmov 0   ;;  %vm32_vm1 = vcmask 261120   ;;  %v29_v1 = vld [vmem:[#allocation3] sm:$0xff]  ;;  %v31_v3 = vstv %s256_s2 }
  0x13   :  { %139 = vmatprep.subr.mxu0 %v201_v0  ;;  %141 = vmatprep.mubr.msk.f32.mxu0 %vm202_vm0, %v201_v0  ;;  %v28_v2 = vld [vmem:[%s255_s1] sm:$0x1]  ;;  %s203_s0 = smov [#allocation6]   ;;  %vm118_vm3 = vcmask 57344  }
  0x14   :  { %140 = vmatpush3.xpose.msk.msra.mxu0 %vm32_vm1, %v29_v1  ;;  %s126_s28 = sshll.u32 %s203_s0, 4  ;;  %s127_s28 = int_to_ptr.vmem [resolvable:$true] %s126_s28 }
  0x15   :  { %s174_s1 = scalar_lea.vmem %s127_s28, 16  ;;  %s178_s2 = scalar_lea.vmem %s127_s28, 32 }
  0x16   :  { %p175_p8 = scmp.ne.s32.totalorder %s127_s28, %s174_s1  ;;  %p179_p9 = scmp.lt.s32.totalorder %s127_s28, %s127_s28 }
  0x17   :  { %142 = vmatmul.mubr.msk.f32.vlgmr.msra.gmra.mrb[0].mxu0 %vm32_vm1, %v28_v2  ;;  %p180_p10 = scmp.lt.s32.totalorder %s178_s2, %s174_s1 }
  0x19   :  { %p181_p11 = por %p180_p10, %p179_p9 }
  0x1b   :  { %p182_p12 = pnand %p181_p11, %p175_p8 }
  0xea   :  { %v105_v4 = vpop.f32.mrb[0].mxu0 }
  0xeb   :  { %v106_v5 = vadd.f32 %v105_v4, %v31_v3  ;;  %v143_v6 = vpop.f32.mrb[1].mxu0 }
  0xed   :  { %v109_v7 = vand.u32 2147483647, %v106_v5  ;;  %vm113_vm2 = vcmp.ge.f32.partialorder %v106_v5, 0.0 }
  0xef   :  { %v110_v8 = vsub.f32 0.0, %v109_v7 }
  0xf1   :  { %v111_v9 = vmul.f32 1.442695, %v110_v8 }
  0xf3   :  { %148 = vpow2.f32 %v111_v9 }
  0xfd   :  { %v149_v10 = vpop.eup %148 }
  0xfe   :  { %v115_v11 = vadd.f32 1.0, %v149_v10  ;;  %v114_v13 = vsel %vm113_vm2, 1.0, %v149_v10 }
 0x100   :  { %150 = vrcp.f32 %v115_v11 }
 0x10a   :  { %v151_v12 = vpop.eup %150 }
 0x10b   :  { %v117_v14 = vmul.f32 %v151_v12, %v114_v13 }
 0x10d   :  { %119 = vst.msk [vmem:[#allocation6] sm:$0x1] %vm118_vm3, %v117_v14 }
 0x10e   :  { %185 = shalt.err (!%p182_p12)
}
 0x10f   :  { %s186_s4 = scalar_lea.hbm %s257_s3, 16 }
 0x110   :  { %p187_p13 = scmp.ne.s32.totalorder %s257_s3, %s186_s4  ;;  %p190_p0 = scmp.lt.u32.totalorder %s186_s4, %s257_s3 }
 0x112   :  { %p192_p1 = pnand %p190_p0, %p187_p13 }
 0x114   :  { %195 = shalt.err (!%p192_p1)
}
 0x115   :  { %129 = dma.vmem_to_hbm [thread:$0]  %s127_s28, 16, %s257_s3, [#allocation5]  }
 0x116   :  { %198 = dma.done.wait [#allocation5], 16  }
 0x117   :  { %199 = vsyncadd [#allocation5], 4294967280 }
 0x118   :  { %133 = vsyncpa [#allocation4], 1 }
 0x119   :  { %134 = vsyncpa [#allocation5], 1 }

</bundles_post_ra>
